<compile_context>
chip_gen: v7x
topology: tpu7x:2x2x1
jax: 0.10.0
libtpu: 0.0.40
codegen_flags: <defaults>
</compile_context>

<pallas_src>
import jax
import jax.numpy as jnp
from jax.experimental import pallas as pl
from jax.experimental.pallas import tpu as pltpu


def _attention_kernel(g_ref, x_ref, wg_ref, wx_ref, bgx_ref, wp_ref, bp_ref, out_ref):
    """Fused attention gate, channel-major (pixels on lanes).

    g_ref:   (g_c, T)     gating-signal pixels
    x_ref:   (x_c, T)     skip-connection pixels
    wg_ref:  (out_c, g_c) folded conv+BN weight (W @ g layout)
    wx_ref:  (out_c, x_c) folded conv+BN weight
    bgx_ref: (out_c, 1)   combined folded bias (bg_eff + bx_eff)
    wp_ref:  (out_c, 1)   psi conv weight as a column (broadcast-mult)
    bp_ref:  (1,) SMEM    psi folded bias (scalar)
    out_ref: (x_c, T)
    """
    g = g_ref[...].astype(jnp.float32)
    x = x_ref[...].astype(jnp.float32)

    # relu(Wg@g + Wx@x + (bg + bx))  -> (out_c, T), lane-dense
    t = (jnp.dot(wg_ref[...], g, preferred_element_type=jnp.float32)
         + jnp.dot(wx_ref[...], x, preferred_element_type=jnp.float32)
         + bgx_ref[...])
    p = jnp.maximum(t, 0.0)

    # psi conv (out_c -> 1) + BN + sigmoid: broadcast-mult + cross-sublane reduce
    # instead of a degenerate N=1 MXU matmul.
    s = jnp.sum(p * wp_ref[...], axis=0, keepdims=True) + bp_ref[0]   # (1, T)
    s = jax.nn.sigmoid(s)

    # gate the skip connection (broadcast gate over channels / sublanes)
    out_ref[...] = (x * s).astype(out_ref.dtype)


def _fold_bn(w, b, gamma, beta, mean, var, eps=1e-5):
    """Fold inference-mode BatchNorm into a 1x1 conv: returns (W_eff, b_eff).

    w: (C_in, C_out), b/gamma/beta/mean/var: (C_out,)
    """
    scale = gamma / jnp.sqrt(var + eps)
    w_eff = w * scale[None, :]
    b_eff = (b - mean) * scale + beta
    return w_eff, b_eff


def attention_block_forward(g, x, params, *, tile=4096):
    """g: (N, g_c, H, W), x: (N, x_c, H, W)  ->  (N, x_c, H, W).

    `tile` = pixels per grid step (must be a multiple of 128 when smaller than H*W).
    """
    N, g_c, H, W = g.shape
    _, x_c, _, _ = x.shape

    wg, bg = _fold_bn(params["wg"], params["bg"], params["gamma_g"],
                      params["beta_g"], params["mean_g"], params["var_g"])
    wx, bx = _fold_bn(params["wx"], params["bx"], params["gamma_x"],
                      params["beta_x"], params["mean_x"], params["var_x"])
    wp, bp = _fold_bn(params["wp"], params["bp"], params["gamma_p"],
                      params["beta_p"], params["mean_p"], params["var_p"])

    out_c = wg.shape[1]

    # Channel-major operands (tiny; transposed once on the host).
    wg_t = jnp.transpose(wg)              # (out_c, g_c)
    wx_t = jnp.transpose(wx)              # (out_c, x_c)
    b_gx = (bg + bx).reshape(out_c, 1)    # fused branch bias
    wp_col = wp.reshape(out_c, 1)
    bp_s = bp.reshape(1)                  # SMEM scalar

    # NCHW -> (N, C, H*W): free reshape, no transpose, pixels in the lane dim.
    hw = H * W
    g3 = g.reshape(N, g_c, hw)
    x3 = x.reshape(N, x_c, hw)

    if hw <= tile:
        tile_eff = hw                     # single block == full pixel dim (always legal)
        hw_p = hw
    else:
        assert tile % 128 == 0, "tile must be a multiple of 128"
        tile_eff = tile
        hw_p = -(-hw // tile_eff) * tile_eff
        if hw_p != hw:                    # pad pixels so the grid covers hw exactly
            pad = hw_p - hw
            g3 = jnp.pad(g3, ((0, 0), (0, 0), (0, pad)))
            x3 = jnp.pad(x3, ((0, 0), (0, 0), (0, pad)))

    grid = (N, hw_p // tile_eff)

    out3 = pl.pallas_call(
        _attention_kernel,
        out_shape=jax.ShapeDtypeStruct((N, x_c, hw_p), x.dtype),
        grid=grid,
        in_specs=[
            pl.BlockSpec((None, g_c, tile_eff), lambda n, j: (n, 0, j)),   # g pixels
            pl.BlockSpec((None, x_c, tile_eff), lambda n, j: (n, 0, j)),   # x pixels
            pl.BlockSpec((out_c, g_c), lambda n, j: (0, 0)),               # Wg (BN folded)
            pl.BlockSpec((out_c, x_c), lambda n, j: (0, 0)),               # Wx (BN folded)
            pl.BlockSpec((out_c, 1), lambda n, j: (0, 0)),                 # bg + bx
            pl.BlockSpec((out_c, 1), lambda n, j: (0, 0)),                 # Wp (column)
            pl.BlockSpec(memory_space=pltpu.MemorySpace.SMEM),             # bp scalar
        ],
        out_specs=pl.BlockSpec((None, x_c, tile_eff), lambda n, j: (n, 0, j)),
        compiler_params=pltpu.CompilerParams(
            dimension_semantics=("parallel", "parallel")),
    )(g3, x3, wg_t, wx_t, b_gx, wp_col, bp_s)

    if hw_p != hw:
        out3 = out3[:, :, :hw]
    return out3.reshape(N, x_c, H, W)


def make_params(key, g_c, x_c, out_c, dtype=jnp.float32):
    ks = jax.random.split(key, 6)
    p = {
        # 1x1 conv weights stored as (C_in, C_out); biases (C_out,)
        "wg": jax.random.normal(ks[0], (g_c, out_c), dtype) * 0.2,
        "bg": jax.random.normal(ks[1], (out_c,), dtype) * 0.1,
        "wx": jax.random.normal(ks[2], (x_c, out_c), dtype) * 0.2,
        "bx": jax.random.normal(ks[3], (out_c,), dtype) * 0.1,
        "wp": jax.random.normal(ks[4], (out_c, 1), dtype) * 0.2,
        "bp": jax.random.normal(ks[5], (1,), dtype) * 0.1,
        # BatchNorm params (inference mode)
        "gamma_g": jnp.ones((out_c,), dtype), "beta_g": jnp.full((out_c,), 0.05, dtype),
        "mean_g": jnp.full((out_c,), 0.02, dtype), "var_g": jnp.full((out_c,), 0.9, dtype),
        "gamma_x": jnp.ones((out_c,), dtype), "beta_x": jnp.full((out_c,), -0.05, dtype),
        "mean_x": jnp.full((out_c,), -0.01, dtype), "var_x": jnp.full((out_c,), 1.1, dtype),
        "gamma_p": jnp.ones((1,), dtype), "beta_p": jnp.zeros((1,), dtype),
        "mean_p": jnp.full((1,), 0.03, dtype), "var_p": jnp.full((1,), 1.0, dtype),
    }
    return p


def _reference(g, x, params, eps=1e-5):
    """Plain-JAX reference of the same (inference-BN) forward pass."""
    def bn(y, gamma, beta, mean, var):
        return gamma * (y - mean) / jnp.sqrt(var + eps) + beta

    g_f = jnp.transpose(g, (0, 2, 3, 1))
    x_f = jnp.transpose(x, (0, 2, 3, 1))
    g1 = bn(g_f @ params["wg"] + params["bg"], params["gamma_g"],
            params["beta_g"], params["mean_g"], params["var_g"])
    x1 = bn(x_f @ params["wx"] + params["bx"], params["gamma_x"],
            params["beta_x"], params["mean_x"], params["var_x"])
    p = jax.nn.relu(g1 + x1)
    s = bn(p @ params["wp"] + params["bp"], params["gamma_p"],
           params["beta_p"], params["mean_p"], params["var_p"])
    s = jax.nn.sigmoid(s)
    out = x_f * s
    return jnp.transpose(out, (0, 3, 1, 2))


if __name__ == "__main__":
    key = jax.random.PRNGKey(0)
    k_g, k_x, k_p = jax.random.split(key, 3)

    N, H, W = 2, 16, 16
    g_c, x_c, out_c = 6, 4, 8

    g = jax.random.normal(k_g, (N, g_c, H, W), jnp.float32)
    x = jax.random.normal(k_x, (N, x_c, H, W), jnp.float32)
    params = make_params(k_p, g_c, x_c, out_c)

    out = attention_block_forward(g, x, params)
    out = jax.block_until_ready(out)

    ref = _reference(g, x, params)
    assert out.shape == (N, x_c, H, W)
    assert jnp.allclose(out, ref, atol=1e-5, rtol=1e-5)

    print("KERNEL_OK")
</pallas_src>

<mosaic_0001>
module attributes {stable_mosaic.version = 11 : i64} {
  func.func @_attention_kernel(%arg0: i32, %arg1: i32, %arg2: memref<1x6x256xf32, #tpu.memory_space<vmem>>, %arg3: memref<1x4x256xf32, #tpu.memory_space<vmem>>, %arg4: memref<8x6xf32, #tpu.memory_space<vmem>>, %arg5: memref<8x4xf32, #tpu.memory_space<vmem>>, %arg6: memref<8x1xf32, #tpu.memory_space<vmem>>, %arg7: memref<8x1xf32, #tpu.memory_space<vmem>>, %arg8: memref<1xf32, #tpu.memory_space<smem>>, %arg9: memref<1x4x256xf32, #tpu.memory_space<vmem>>) attributes {dimension_semantics = [#tpu.dimension_semantics<parallel>, #tpu.dimension_semantics<parallel>], iteration_bounds = array<i64: 2, 1>, scalar_prefetch = 0 : i64, scratch_operands = 0 : i64, tpu.core_type = #tpu.core_type<tc>, window_params = [{transform_indices = @transform_0, window_bounds = array<i64: 1, 6, 256>}, {transform_indices = @transform_1, window_bounds = array<i64: 1, 4, 256>}, {pipeline_mode = #tpu.pipeline_mode<synchronous>, transform_indices = @transform_2, window_bounds = array<i64: 8, 6>}, {pipeline_mode = #tpu.pipeline_mode<synchronous>, transform_indices = @transform_3, window_bounds = array<i64: 8, 4>}, {pipeline_mode = #tpu.pipeline_mode<synchronous>, transform_indices = @transform_4, window_bounds = array<i64: 8, 1>}, {pipeline_mode = #tpu.pipeline_mode<synchronous>, transform_indices = @transform_5, window_bounds = array<i64: 8, 1>}, {transform_indices = @transform_6, window_bounds = array<i64: 1>}, {transform_indices = @transform_7, window_bounds = array<i64: 1, 4, 256>}]} {
    %c0 = arith.constant 0 : index
    %c0_0 = arith.constant 0 : index
    %c0_1 = arith.constant 0 : index
    %0 = vector.load %arg2[%c0, %c0_0, %c0_1] : memref<1x6x256xf32, #tpu.memory_space<vmem>>, vector<1x6x256xf32>
    %1 = vector.shape_cast %0 : vector<1x6x256xf32> to vector<6x256xf32>
    %c0_2 = arith.constant 0 : index
    %c0_3 = arith.constant 0 : index
    %c0_4 = arith.constant 0 : index
    %2 = vector.load %arg3[%c0_2, %c0_3, %c0_4] : memref<1x4x256xf32, #tpu.memory_space<vmem>>, vector<1x4x256xf32>
    %3 = vector.shape_cast %2 : vector<1x4x256xf32> to vector<4x256xf32>
    %c0_5 = arith.constant 0 : index
    %c0_6 = arith.constant 0 : index
    %4 = vector.load %arg4[%c0_5, %c0_6] : memref<8x6xf32, #tpu.memory_space<vmem>>, vector<8x6xf32>
    %cst = arith.constant dense<0.000000e+00> : vector<8x256xf32>
    %5 = tpu.matmul %4, %1, %cst {dimension_numbers = #tpu.dot_dimension_numbers<[1], [0], [0], [1], [0, 0, 1, 1], [], []>} : vector<8x6xf32>, vector<6x256xf32>, vector<8x256xf32> -> vector<8x256xf32>
    %c0_7 = arith.constant 0 : index
    %c0_8 = arith.constant 0 : index
    %6 = vector.load %arg5[%c0_7, %c0_8] : memref<8x4xf32, #tpu.memory_space<vmem>>, vector<8x4xf32>
    %cst_9 = arith.constant dense<0.000000e+00> : vector<8x256xf32>
    %7 = tpu.matmul %6, %3, %cst_9 {dimension_numbers = #tpu.dot_dimension_numbers<[1], [0], [0], [1], [0, 0, 1, 1], [], []>} : vector<8x4xf32>, vector<4x256xf32>, vector<8x256xf32> -> vector<8x256xf32>
    %8 = arith.addf %5, %7 : vector<8x256xf32>
    %c0_10 = arith.constant 0 : index
    %c0_11 = arith.constant 0 : index
    %9 = vector.load %arg6[%c0_10, %c0_11] : memref<8x1xf32, #tpu.memory_space<vmem>>, vector<8x1xf32>
    %10 = vector.broadcast %9 : vector<8x1xf32> to vector<8x256xf32>
    %11 = arith.addf %8, %10 : vector<8x256xf32>
    %cst_12 = arith.constant 0.000000e+00 : f32
    %12 = vector.broadcast %cst_12 : f32 to vector<8x256xf32>
    %13 = arith.maximumf %11, %12 : vector<8x256xf32>
    %c0_13 = arith.constant 0 : index
    %c0_14 = arith.constant 0 : index
    %14 = vector.load %arg7[%c0_13, %c0_14] : memref<8x1xf32, #tpu.memory_space<vmem>>, vector<8x1xf32>
    %15 = vector.broadcast %14 : vector<8x1xf32> to vector<8x256xf32>
    %16 = arith.mulf %13, %15 : vector<8x256xf32>
    %cst_15 = arith.constant dense<0.000000e+00> : vector<256xf32>
    %17 = vector.multi_reduction <add>, %16, %cst_15 [0] : vector<8x256xf32> to vector<256xf32>
    %18 = vector.shape_cast %17 : vector<256xf32> to vector<1x256xf32>
    %c0_16 = arith.constant 0 : index
    %19 = memref.load %arg8[%c0_16] : memref<1xf32, #tpu.memory_space<smem>>
    %20 = vector.broadcast %19 : f32 to vector<1x256xf32>
    %21 = arith.addf %18, %20 : vector<1x256xf32>
    %22 = arith.negf %21 : vector<1x256xf32>
    %23 = math.exp %22 : vector<1x256xf32>
    %cst_17 = arith.constant 1.000000e+00 : f32
    %24 = vector.broadcast %cst_17 : f32 to vector<1x256xf32>
    %25 = arith.addf %24, %23 : vector<1x256xf32>
    %26 = arith.divf %24, %25 : vector<1x256xf32>
    %27 = vector.broadcast %26 : vector<1x256xf32> to vector<4x256xf32>
    %28 = arith.mulf %3, %27 : vector<4x256xf32>
    %c0_18 = arith.constant 0 : index
    %c0_19 = arith.constant 0 : index
    %c0_20 = arith.constant 0 : index
    %29 = vector.load %arg9[%c0_18, %c0_19, %c0_20] : memref<1x4x256xf32, #tpu.memory_space<vmem>>, vector<1x4x256xf32>
    %30 = vector.shape_cast %29 : vector<1x4x256xf32> to vector<4x256xf32>
    %31 = vector.shape_cast %28 : vector<4x256xf32> to vector<1x4x256xf32>
    tpu.vector_store %arg9[%c0_18, %c0_19, %c0_20], %31 {strides = array<i32>} : memref<1x4x256xf32, #tpu.memory_space<vmem>>, vector<1x4x256xf32>,
    return
  }
  func.func @transform_0(%arg0: i32, %arg1: i32) -> (i32, i32, i32) {
    %c0_i32 = arith.constant 0 : i32
    %c0_i32_0 = arith.constant 0 : i32
    return %arg0, %c0_i32, %arg1 : i32, i32, i32
  }
  func.func @transform_1(%arg0: i32, %arg1: i32) -> (i32, i32, i32) {
    %c0_i32 = arith.constant 0 : i32
    %c0_i32_0 = arith.constant 0 : i32
    return %arg0, %c0_i32, %arg1 : i32, i32, i32
  }
  func.func @transform_2(%arg0: i32, %arg1: i32) -> (i32, i32) {
    %c0_i32 = arith.constant 0 : i32
    %c0_i32_0 = arith.constant 0 : i32
    %c0_i32_1 = arith.constant 0 : i32
    return %c0_i32, %c0_i32_0 : i32, i32
  }
  func.func @transform_3(%arg0: i32, %arg1: i32) -> (i32, i32) {
    %c0_i32 = arith.constant 0 : i32
    %c0_i32_0 = arith.constant 0 : i32
    %c0_i32_1 = arith.constant 0 : i32
    return %c0_i32, %c0_i32_0 : i32, i32
  }
  func.func @transform_4(%arg0: i32, %arg1: i32) -> (i32, i32) {
    %c0_i32 = arith.constant 0 : i32
    %c0_i32_0 = arith.constant 0 : i32
    %c0_i32_1 = arith.constant 0 : i32
    return %c0_i32, %c0_i32_0 : i32, i32
  }
  func.func @transform_5(%arg0: i32, %arg1: i32) -> (i32, i32) {
    %c0_i32 = arith.constant 0 : i32
    %c0_i32_0 = arith.constant 0 : i32
    %c0_i32_1 = arith.constant 0 : i32
    return %c0_i32, %c0_i32_0 : i32, i32
  }
  func.func @transform_6(%arg0: i32, %arg1: i32) -> i32 {
    %c0_i32 = arith.constant 0 : i32
    %c0_i32_0 = arith.constant 0 : i32
    return %c0_i32 : i32
  }
  func.func @transform_7(%arg0: i32, %arg1: i32) -> (i32, i32, i32) {
    %c0_i32 = arith.constant 0 : i32
    %c0_i32_0 = arith.constant 0 : i32
    return %arg0, %c0_i32, %arg1 : i32, i32, i32
  }
}

</mosaic_0001>

<bundles_post_ra>
// kernel: tpu_custom_call.1
= control target key start
LH: loop header
LB: loop body
LE: loop exit
PB: predicated region body
PF: predicated region fallthrough
CT: control target
= control target key end

     0   :  { %s1025_s0 = inlined_call_operand.vmem [shape: f32[2,6,256], index: 0, kind: input, shape index: {}]   ;;  %s1026_s1 = inlined_call_operand.vmem [shape: f32[2,4,256], index: 1, kind: input, shape index: {}]   ;;  %s1027_s2 = inlined_call_operand.vmem [shape: f32[8,6], index: 2, kind: input, shape index: {}]   ;;  %s1028_s3 = inlined_call_operand.vmem [shape: f32[8,4], index: 3, kind: input, shape index: {}]   ;;  %s1029_s4 = inlined_call_operand.vmem [shape: f32[8,1], index: 4, kind: input, shape index: {}]   ;;  %s1030_s5 = inlined_call_operand.vmem [shape: f32[8,1], index: 5, kind: input, shape index: {}]   ;;  %s1031_s6 = inlined_call_operand.<no memory space> [shape: f32[1], index: 6, kind: input, shape index: {}]   ;;  %s1032_s7 = inlined_call_operand.hbm [shape: f32[2,4,256], index: 7, kind: output, shape index: {}]  }
   0x1   :  { %12 = sst [smem:[#allocation2]] %s1031_s6 }
   0x2   :  { %13 = vsyncpa [#allocation4], 0 }
   0x3   :  { %15 = vsyncpa [#allocation4 + $0x1], 0  ;;  %s898_s26 = smov 0   ;;  %s900_s27 = smov 0  }
   0x4   :  { %s902_s28 = smov 0   ;;  %s904_s29 = smov 0  }
   0x5   :  { %s906_s30 = smov 0   ;;  %s908_s8 = smov 0  }
   0x6 LB: > { %s677_s6 = sadd.s32 4294967295, %s850_s8   ;;  %s678_s9 = sadd.s32 4294967294, %s850_s8   ;;  %s850_s8 = sphi %s908_s8, %s21_s8   ;;  %s846_s30 = sphi %s906_s30, %s1039_s30   ;;  %s842_s29 = sphi %s904_s29, %s1038_s29   ;;  %s838_s28 = sphi %s902_s28, %s1037_s28   ;;  %s834_s27 = sphi %s900_s27, %s1036_s27   ;;  %s830_s26 = sphi %s898_s26, %s1035_s26  }
   0x7   : > { %s33_s10 = sadd.s32 1, %s846_s30  ;;  %s203_s11 = sadd.s32 1, %s838_s28 }
   0x8   : > { %p35_p0 = scmp.ge.s32.totalorder %s33_s10, 2  ;;  %p213_p1 = scmp.ne.s32.totalorder %s838_s28, %s834_s27 }
   0x9   : > { %p214_p2 = scmp.eq.s32.totalorder %s677_s6, 1  ;;  %p219_p3 = scmp.ne.s32.totalorder %s834_s27, %s830_s26 }
   0xa   : > { %s1041_s10 = smov (%p35_p0, %s33_s10), 0  ;;  %p220_p5 = scmp.eq.s32.totalorder %s678_s9, 1 }
   0xb   : > { %p938_p4 = por %p214_p2, %p213_p1  ;;  %s198_s13 = ssub.s32 %s846_s30, %s1041_s10 }
   0xc   : > { %p681_p6 = scmp.ge.s32.totalorder %s850_s8, 1  ;;  %p201_p7 = scmp.eq.s32.totalorder %s198_s13, 0 }
   0xd   : > { %p945_p8 = por %p220_p5, %p219_p3  ;;  %p279_p9 = scmp.lt.s32.totalorder %s850_s8, 3 }
   0xe   : > { %s951_s15 = scalar_select %p201_p7, %s838_s28, %s203_s11  }
   0xf   : > { %p280_p10 = pnand %p681_p6, %p279_p9 }
  0x10   : > { %p325_p11 = scmp.lt.s32.totalorder (!%p280_p10), %s842_s29, 1  ;;  %v852_v0 = vmov (!%p280_p10), 0.0   ;;  %v514_v1 = vld [vmem:[%s1029_s4] sm:$0xff] (!%p280_p10)  ;;  %v853_v2 = vmov (!%p280_p10), 0   ;;  %vm436_vm0 = vcmask (!%p280_p10), 1045504   ;;  %vm356_vm1 = vcmask (!%p280_p10), 1043456  }
  0x11   : > { %283 = sbr.rel (%p280_p10) target bundleno = 312 (0x138), region = 48  ;;  %507 = vmatprep.mubr.f32.mxu0 (!%p280_p10), %v852_v0  ;;  %425 = vmatprep.mubr.f32.mxu1 (!%p280_p10), %v852_v0  ;;  %v524_v3 = vld [vmem:[%s1030_s5] sm:$0xff] (!%p280_p10)  ;;  %vm432_vm2 = vcmask (!%p280_p10), 48128   ;;  %vm352_vm3 = vcmask (!%p280_p10), 31744   ;;  %s702_s22 = sshll.u32 (!%p280_p10), %s842_s29, 7 }
  0x12   : > { %762 = vset.pattern.permute.xlu0 (!%p280_p10), %v853_v2  ;;  %v348_v4 = vld [vmem:[%s1027_s2] sm:$0xff] (!%p280_p10)  ;;  %s978_s9 = scalar_lea.hbm (!%p280_p10), %s1032_s7, %s702_s22 }
  0x13   : > { %517 = vperm.xlu0 (!%p280_p10), %762, %v514_v1   ;;  %v349_v9 = vld [vmem:[%s1028_s3] sm:$0xff] (!%p280_p10) }
  0x17   : > { %527 = vperm.xlu0 (!%p280_p10), %762, %v524_v3  }
  0x18   : > { %s326_s18 = scalar_select %p325_p11, %s842_s29, 1 }
  0x19   : > { %s854_s29 = smov [#allocation3]  }
  0x1a   : > { %s700_s19 = sshll.u32 %s326_s18, 4  ;;  %s701_s20 = sshll.u32 %s326_s18, 3 }
  0x1b   : > { %s332_s25 = scalar_lea.vmem %s1025_s0, %s700_s19  ;;  %s342_s11 = scalar_lea.vmem %s1026_s1, %s701_s20 }
  0x1c   : > { %v346_v5 = vld [vmem:[%s332_s25 + $0x8] sm:$0x3f]  ;;  %v347_v6 = vld [vmem:[%s342_s11] sm:$0xff]  ;;  %s544_s19 = sld [smem:[#allocation2]]  ;;  %s321_s20 = sand.u32 1, %s834_s27  }
  0x1d   : > { %v345_v7 = vld [vmem:[%s332_s25] sm:$0x3f]  ;;  %690 = vmatprep.subr.msk.mxu0 %vm436_vm0, %v346_v5  ;;  %v351_v8 = vcombine.high %v347_v6, %v347_v6  ;;  %s682_s21 = sshll.u32 %s321_s20, 3  ;;  %s567_s11 = scalar_lea.sflag [#allocation4], %s321_s20 }
  0x1e   : > { %691 = vmatpush1.msk.msra.mxu0 %vm436_vm0, %v345_v7  ;;  %s323_s23 = scalar_lea.vmem [#allocation3], %s682_s21  ;;  %s776_s16 = sshll.u32 %s854_s29, 4  ;;  %s777_s16 = int_to_ptr.vmem [resolvable:$false] %s776_s16 }
  0x1f   : > { %687 = vmatprep.subr.msk.mxu1 %vm356_vm1, %v351_v8  ;;  %692 = vmatmul.mubr.msk.f32.vlgmr.msra.gmra.mrb[0].mxu0 %vm432_vm2, %v348_v4  ;;  %s583_s24 = sshll.u32 %s323_s23, 4  ;;  %s778_s17 = scalar_lea.vmem %s777_s16, 256  ;;  %s980_s24 = int_to_ptr.vmem [resolvable:$true] %s583_s24 }
  0x20   : > { %688 = vmatpush1.msk.msra.mxu1 %vm356_vm1, %v347_v6  ;;  %s772_s13 = scalar_lea.vmem %s980_s24, 128  ;;  %p779_p1 = scmp.lt.s32.totalorder %s980_s24, %s777_s16 }
  0x21   : > { %689 = vmatmul.mubr.msk.f32.vlgmr.msra.gmra.mrb[0].mxu1 %vm352_vm3, %v349_v9  ;;  %p773_p12 = scmp.ne.s32.totalorder %s980_s24, %s772_s13  ;;  %p780_p2 = scmp.lt.s32.totalorder %s778_s17, %s772_s13 }
  0x22   : > { %v545_v33 = vstv %s544_s19 }
  0x23   : > { %p774_p13 = pnand %p773_p12, %p938_p4  ;;  %p781_p3 = por %p780_p2, %p779_p1 }
  0x25   : > { %p775_p0 = pneg %p774_p13 }
  0x27   : > { %p782_p5 = pnand %p781_p3, %p775_p0 }
  0x92   : > { %v518_v12 = vpop.permute.xlu0 %517 }
  0x96   : > { %v528_v20 = vpop.permute.xlu0 %527 }
  0xf2   : > { %v509_v10 = vpop.f32.mrb[0].mxu0 }
  0xf3   : > { %v511_v11 = vpop.f32.mrb[1].mxu0 }
  0xf4   : > { %v427_v13 = vpop.f32.mrb[0].mxu1 }
  0xf5   : > { %v510_v14 = vadd.f32 %v509_v10, %v427_v13  ;;  %v429_v15 = vpop.f32.mrb[1].mxu1 }
  0xf6   : > { %v512_v16 = vadd.f32 %v511_v11, %v429_v15 }
  0xf7   : > { %v520_v17 = vadd.f32 %v518_v12, %v510_v14 }
  0xf8   : > { %v521_v18 = vadd.f32 %v518_v12, %v512_v16 }
  0xf9   : > { %v522_v19 = vmax.f32 %v520_v17, 0.0 }
  0xfa   : > { %v523_v21 = vmax.f32 %v521_v18, 0.0 }
  0xfb   : > { %v530_v22 = vmul.f32 %v528_v20, %v522_v19 }
  0xfc   : > { %v531_v23 = vmul.f32 %v528_v20, %v523_v21 }
  0xfd   : > { %v532_v24 = vrot.slane %v530_v22, 4 }
  0xfe   : > { %v538_v25 = vrot.slane %v531_v23, 4 }
  0xff   : > { %v533_v26 = vadd.f32 %v532_v24, %v530_v22 }
 0x100   : > { %v539_v27 = vadd.f32 %v538_v25, %v531_v23 }
 0x101   : > { %v534_v28 = vrot.slane %v533_v26, 2 }
 0x102   : > { %v540_v29 = vrot.slane %v539_v27, 2 }
 0x103   : > { %v535_v30 = vadd.f32 %v534_v28, %v533_v26 }
 0x104   : > { %v541_v31 = vadd.f32 %v540_v29, %v539_v27 }
 0x105   : > { %v536_v32 = vrot.slane %v535_v30, 1 }
 0x106   : > { %v542_v34 = vrot.slane %v541_v31, 1 }
 0x107   : > { %v537_v35 = vadd.f32 %v536_v32, %v535_v30 }
 0x108   : > { %v543_v36 = vadd.f32 %v542_v34, %v541_v31 }
 0x109   : > { %v546_v37 = vadd.f32 %v545_v33, %v537_v35 }
 0x10a   : > { %v547_v38 = vadd.f32 %v545_v33, %v543_v36 }
 0x10b   : > { %v693_v39 = vmul.f32 -1.442695, %v546_v37 }
 0x10c   : > { %v694_v40 = vmul.f32 -1.442695, %v547_v38 }
 0x10d   : > { %764 = vpow2.f32 %v693_v39 }
 0x10e   : > { %766 = vpow2.f32 %v694_v40 }
 0x117   : > { %v765_v41 = vpop.eup %764 }
 0x118   : > { %v767_v42 = vpop.eup %766  ;;  %v554_v43 = vadd.f32 1.0, %v765_v41 }
 0x119   : > { %v555_v44 = vadd.f32 1.0, %v767_v42 }
 0x11a   : > { %768 = vrcp.f32 %v554_v43 }
 0x11b   : > { %770 = vrcp.f32 %v555_v44 }
 0x124   : > { %v769_v45 = vpop.eup %768 }
 0x125   : > { %v771_v46 = vpop.eup %770 }
 0x126   : > { %v562_v47 = vcombine.low %v769_v45, %v771_v46 }
 0x128   : > { %v564_v48 = vmul.f32 %v562_v47, %v347_v6 }
 0x12a   : > { %565 = vst [vmem:[%s323_s23] sm:$0xff] %v564_v48 }
 0x12b   : > { %785 = shalt.err (!%p782_p5)
}
 0x12c   : > { %s786_s18 = scalar_lea.hbm %s978_s9, 128  ;;  %s790_s21 = scalar_lea.hbm %s1032_s7, 256 }
 0x12d   : > { %p787_p6 = scmp.ne.s32.totalorder %s978_s9, %s786_s18  ;;  %p791_p10 = scmp.lt.u32.totalorder %s978_s9, %s1032_s7 }
 0x12e   : > { %p792_p11 = scmp.lt.u32.totalorder %s790_s21, %s786_s18  ;;  %p794_p13 = scmp.lt.u32.totalorder %s786_s18, %s978_s9 }
 0x12f   : > { %p788_p7 = pnand %p787_p6, %p938_p4 }
 0x130   : > { %p793_p12 = por %p792_p11, %p791_p10 }
 0x131   : > { %p789_p9 = pneg %p788_p7 }
 0x132   : > { %p795_p0 = por %p794_p13, %p793_p12 }
 0x134   : > { %p796_p1 = pnand %p795_p0, %p789_p9 }
 0x136   : > { %799 = shalt.err (!%p796_p1)
}
 0x137   : > { %705 = dma.vmem_to_hbm [thread:$0]  (%p938_p4), %s980_s24, 128, %s978_s9, %s567_s11  }
 0x138 PF: > { %p711_p2 = scmp.ge.s32.totalorder %s850_s8, 2  ;;  %s595_s25 = sand.u32 1, %s830_s26  }
 0x139   : > { %s596_s6 = scalar_lea.sflag [#allocation4], %s595_s25 }
 0x13a   : > { %p708_p3 = pnand %p711_p2, %p945_p8 }
 0x13c   : > { %825 = dma.done.wait (!%p708_p3), %s596_s6, 128  }
 0x13d   : > { %827 = vsyncadd (!%p708_p3), %s596_s6, 4294967168  ;;  %s21_s8 = sadd.s32 1, %s850_s8   ;;  %s1035_s26 = smov %s834_s27 }
 0x13e   : > { %p18_p5 = scmp.ge.s32.totalorder %s21_s8, 4   ;;  %s1036_s27 = smov %s838_s28 }
 0x13f   : > { %s1037_s28 = smov %s951_s15  ;;  %s1038_s29 = smov %s846_s30 }
 0x140   : > { %s1039_s30 = smov %s1041_s10  ;;  %20 = sbr.rel (!%p18_p5) target bundleno = 6 (0x6), region = 86 }
 0x147   :  { %601 = vsyncpa [#allocation4], 1 }
 0x148   :  { %603 = vsyncpa [#allocation4 + $0x1], 1 }

</bundles_post_ra>
